<compile_context>
chip_gen: v5e
topology: v5e:2x2
jax: 0.10.0
libtpu: 0.0.40
codegen_flags: <defaults>
</compile_context>

<pallas_src>
import jax
import jax.numpy as jnp
from jax.experimental import pallas as pl
from jax.experimental.pallas import tpu as pltpu


def _up_conv_bn_relu_kernel(xp_ref, w_ref, gamma_ref, beta_ref, spread_ref,
                            out_ref):
    # xp_ref:     (N, H+2, (W+2)*Cin) bf16  zero-padded ORIGINAL-res input,
    #                                        lanes = (x', cin)
    # w_ref:      (3, (W+2)*Cin, W*4*Cout) bf16  banded subpixel conv weight
    # gamma_ref:  (Cout, 1) f32   BN scale
    # beta_ref:   (Cout, 1) f32   BN shift
    # spread_ref: (Cout, W*4*Cout) f32  0/1 map channel <-> packed column
    # out_ref:    (N*H, W*4*Cout) f32   lanes = (x, phase, cout)
    N, Hp, WpC = xp_ref.shape
    H = Hp - 2
    NH, W4C = out_ref.shape
    Cout = gamma_ref.shape[0]
    eps = 1e-5

    # ---- Convolution: 3 accumulated MXU matmuls (one per vertical tap ty).
    # ty shifts are sublane-offset loads; horizontal taps are folded into the
    # banded weight, so there is no im2col scratch and no strided relayout.
    # bf16 operands, f32 accumulation.
    conv = jnp.zeros((NH, W4C), dtype=jnp.float32)
    for ty in range(3):
        tap = xp_ref[:, ty:ty + H, :].reshape(NH, WpC)        # bf16 (NH, WpC)
        conv = conv + jnp.dot(tap, w_ref[ty],
                              preferred_element_type=jnp.float32)

    # ---- BatchNorm2d training-mode (biased) statistics over all N*2H*2W
    # samples per channel == all NH rows x (4W) column-groups.  Single pass
    # (sum and sum-of-squares), fold packed columns -> channels with the 0/1
    # spread matrix, then a fused normalize (no `centered` intermediate).
    inv_cnt = 1.0 / (NH * (W4C // Cout))                      # 1 / (N*2H*2W)
    col_sum = jnp.sum(conv, axis=0, keepdims=True)            # (1, W4C)
    col_sq = jnp.sum(conv * conv, axis=0, keepdims=True)      # (1, W4C)
    spread = spread_ref[...]                                  # (Cout, W4C)
    ch_sum = jnp.sum(col_sum * spread, axis=1, keepdims=True)  # (Cout, 1)
    ch_sq = jnp.sum(col_sq * spread, axis=1, keepdims=True)    # (Cout, 1)

    mean = ch_sum * inv_cnt
    var = ch_sq * inv_cnt - mean * mean                       # biased variance
    inv_std = jax.lax.rsqrt(var + eps)                        # EUP
    scale = inv_std * gamma_ref[...]                          # (Cout, 1)
    bias = beta_ref[...] - mean * scale                       # (Cout, 1)

    # Expand per-channel scale/bias back to the lane-dense column layout.
    scale_c = jnp.sum(scale * spread, axis=0, keepdims=True)  # (1, W4C)
    bias_c = jnp.sum(bias * spread, axis=0, keepdims=True)    # (1, W4C)

    y = conv * scale_c + bias_c
    out_ref[...] = jnp.maximum(y, 0.0).astype(out_ref.dtype)  # ReLU


def _fold_subpixel_weights(w_oihw):
    """Fold (2x nearest upsample -> 3x3 conv, pad 1) into per-phase taps over
    the 1-px-padded ORIGINAL-resolution input.

    Returns wc[ty, tx, cin, py, px, cout], shape (3, 3, Cin, 2, 2, Cout):
    contribution of padded-original tap (ty, tx) to output phase (py, px)."""
    # R[phase, tap, k]: which 3x3 kernel row k reads which original-res tap
    # row (in 1-px-padded coordinates) for that output phase.
    R = jnp.array([[[1., 0., 0.],
                    [0., 1., 1.],
                    [0., 0., 0.]],
                   [[0., 0., 0.],
                    [1., 1., 0.],
                    [0., 0., 1.]]], dtype=jnp.float32)        # (2, 3, 3)
    w = w_oihw.astype(jnp.float32)
    return jnp.einsum('pyk,qxl,ockl->yxcpqo', R, R, w)        # (3,3,Cin,2,2,Cout)


def _build_banded_weight(wc, W):
    """Pack the subpixel weights as one banded GEMM matrix per vertical tap:

      B[ty, x'*Cin + c, x*4*Cout + pc] = wc[ty, x' - x, c, pc]  (0 off-band)

    so rows index the padded-input lane layout (x', cin) and columns index the
    lane-dense output layout (x, phase, cout)."""
    _, _, Cin, _, _, Cout = wc.shape
    sel = (jnp.arange(W + 2)[:, None, None]
           == jnp.arange(W)[None, None, :] + jnp.arange(3)[None, :, None])
    sel = sel.astype(jnp.float32)                             # (W+2, 3, W)
    wc2 = wc.reshape(3, 3, Cin, 4 * Cout)                     # (ty, tx, c, pc)
    band = jnp.einsum('utx,ytcq->yucxq', sel, wc2)            # (3,W+2,Cin,W,4Cout)
    return band.reshape(3, (W + 2) * Cin, W * 4 * Cout)


def up_forward(x_nchw, weight_oihw, gamma, beta, scale_factor=2):
    """Forward pass of `up`. x_nchw: (N, Cin, H, W) -> (N, Cout, 2H, 2W)."""
    assert scale_factor == 2, "subpixel folding implemented for scale_factor=2"
    N, Cin, H, W = x_nchw.shape
    Cout = weight_oihw.shape[0]
    W4C = W * 4 * Cout

    # NCHW -> NHWC, 1-px pad at ORIGINAL resolution, flatten (x', cin) into
    # the lane axis, cast bf16.  These are adjacent layout ops that XLA fuses
    # into a single relayout; the upsampled tensor is never built in HBM.
    x = jnp.transpose(x_nchw, (0, 2, 3, 1))
    xp = jnp.pad(x, ((0, 0), (1, 1), (1, 1), (0, 0)))
    xp = xp.reshape(N, H + 2, (W + 2) * Cin).astype(jnp.bfloat16)

    wband = _build_banded_weight(_fold_subpixel_weights(weight_oihw), W)
    wband = wband.astype(jnp.bfloat16)                        # (3,(W+2)*Cin,W4C)

    g = gamma.reshape(Cout, 1).astype(jnp.float32)
    b = beta.reshape(Cout, 1).astype(jnp.float32)

    # 0/1 matrix mapping packed output column (x, phase, cout) <-> channel.
    ch_of_col = jnp.arange(W4C) % Cout
    spread = (ch_of_col[None, :] == jnp.arange(Cout)[:, None]).astype(jnp.float32)

    out2 = pl.pallas_call(
        _up_conv_bn_relu_kernel,
        out_shape=jax.ShapeDtypeStruct((N * H, W4C), jnp.float32),
        in_specs=[pl.BlockSpec(memory_space=pltpu.MemorySpace.VMEM)] * 5,
        out_specs=pl.BlockSpec(memory_space=pltpu.MemorySpace.VMEM),
    )(xp, wband, g, b, spread)

    # (n, y) x (x, py, px, o) -> NCHW (N, Cout, 2H, 2W): one fused XLA
    # transpose performs both the pixel-shuffle and the channel relayout.
    y = out2.reshape(N, H, W, 2, 2, Cout)
    y = jnp.transpose(y, (0, 5, 1, 3, 2, 4))
    return y.reshape(N, Cout, 2 * H, 2 * W)


def _reference_forward(x, w_oihw, gamma, beta, scale_factor=2, eps=1e-5):
    """Pure-JAX f32 reference matching PyTorch semantics (NCHW)."""
    x = jnp.repeat(jnp.repeat(x, scale_factor, axis=2), scale_factor, axis=3)
    conv = jax.lax.conv_general_dilated(
        x, w_oihw, window_strides=(1, 1), padding="SAME",
        dimension_numbers=("NCHW", "OIHW", "NCHW"),
    )
    mean = jnp.mean(conv, axis=(0, 2, 3), keepdims=True)
    var = jnp.mean((conv - mean) ** 2, axis=(0, 2, 3), keepdims=True)
    y = (conv - mean) * jax.lax.rsqrt(var + eps)
    y = y * gamma.reshape(1, -1, 1, 1) + beta.reshape(1, -1, 1, 1)
    return jnp.maximum(y, 0.0)


if __name__ == "__main__":
    in_ch, out_ch = 4, 8
    N, H, W = 2, 16, 16

    key = jax.random.PRNGKey(0)
    kx, kw, kg, kb = jax.random.split(key, 4)
    x = jax.random.normal(kx, (N, in_ch, H, W), dtype=jnp.float32)
    weight = jax.random.normal(kw, (out_ch, in_ch, 3, 3), dtype=jnp.float32) * 0.1
    gamma = 1.0 + 0.1 * jax.random.normal(kg, (out_ch,), dtype=jnp.float32)
    beta = 0.1 * jax.random.normal(kb, (out_ch,), dtype=jnp.float32)

    out = up_forward(x, weight, gamma, beta, scale_factor=2)
    out = jax.block_until_ready(out)

    ref = _reference_forward(x, weight, gamma, beta, scale_factor=2)
    assert out.shape == (N, out_ch, H * 2, W * 2), out.shape
    # bf16 MXU operands -> ~1e-2 parity with the f32 reference.
    assert jnp.allclose(out, ref, atol=3e-2, rtol=3e-2), float(
        jnp.max(jnp.abs(out - ref))
    )
    print("KERNEL_OK")
</pallas_src>

<mosaic_0001>
module attributes {stable_mosaic.version = 11 : i64} {
  func.func @_up_conv_bn_relu_kernel(%arg0: memref<2x18x72xbf16, #tpu.memory_space<vmem>>, %arg1: memref<3x72x512xbf16, #tpu.memory_space<vmem>>, %arg2: memref<8x1xf32, #tpu.memory_space<vmem>>, %arg3: memref<8x1xf32, #tpu.memory_space<vmem>>, %arg4: memref<8x512xf32, #tpu.memory_space<vmem>>, %arg5: memref<32x512xf32, #tpu.memory_space<vmem>>) attributes {dimension_semantics = [], scalar_prefetch = 0 : i64, scratch_operands = 0 : i64, tpu.core_type = #tpu.core_type<tc>} {
    %cst = arith.constant 0.000000e+00 : f32
    %0 = vector.broadcast %cst : f32 to vector<32x512xf32>
    %c0 = arith.constant 0 : index
    %c0_0 = arith.constant 0 : index
    %c0_1 = arith.constant 0 : index
    %1 = vector.load %arg0[%c0, %c0_0, %c0_1] : memref<2x18x72xbf16, #tpu.memory_space<vmem>>, vector<2x16x72xbf16>
    %2 = vector.shape_cast %1 : vector<2x16x72xbf16> to vector<32x72xbf16>
    %c0_2 = arith.constant 0 : index
    %c0_3 = arith.constant 0 : index
    %c0_4 = arith.constant 0 : index
    %3 = vector.load %arg1[%c0_2, %c0_3, %c0_4] : memref<3x72x512xbf16, #tpu.memory_space<vmem>>, vector<1x72x512xbf16>
    %4 = vector.shape_cast %3 : vector<1x72x512xbf16> to vector<72x512xbf16>
    %cst_5 = arith.constant dense<0.000000e+00> : vector<32x512xf32>
    %5 = tpu.matmul %2, %4, %cst_5 {dimension_numbers = #tpu.dot_dimension_numbers<[1], [0], [0], [1], [0, 0, 1, 1], [], []>} : vector<32x72xbf16>, vector<72x512xbf16>, vector<32x512xf32> -> vector<32x512xf32>
    %6 = arith.addf %0, %5 : vector<32x512xf32>
    %c0_6 = arith.constant 0 : index
    %c1 = arith.constant 1 : index
    %c0_7 = arith.constant 0 : index
    %7 = vector.load %arg0[%c0_6, %c1, %c0_7] : memref<2x18x72xbf16, #tpu.memory_space<vmem>>, vector<2x16x72xbf16>
    %8 = vector.shape_cast %7 : vector<2x16x72xbf16> to vector<32x72xbf16>
    %c1_8 = arith.constant 1 : index
    %c0_9 = arith.constant 0 : index
    %c0_10 = arith.constant 0 : index
    %9 = vector.load %arg1[%c1_8, %c0_9, %c0_10] : memref<3x72x512xbf16, #tpu.memory_space<vmem>>, vector<1x72x512xbf16>
    %10 = vector.shape_cast %9 : vector<1x72x512xbf16> to vector<72x512xbf16>
    %cst_11 = arith.constant dense<0.000000e+00> : vector<32x512xf32>
    %11 = tpu.matmul %8, %10, %cst_11 {dimension_numbers = #tpu.dot_dimension_numbers<[1], [0], [0], [1], [0, 0, 1, 1], [], []>} : vector<32x72xbf16>, vector<72x512xbf16>, vector<32x512xf32> -> vector<32x512xf32>
    %12 = arith.addf %6, %11 : vector<32x512xf32>
    %c0_12 = arith.constant 0 : index
    %c2 = arith.constant 2 : index
    %c0_13 = arith.constant 0 : index
    %13 = vector.load %arg0[%c0_12, %c2, %c0_13] : memref<2x18x72xbf16, #tpu.memory_space<vmem>>, vector<2x16x72xbf16>
    %14 = vector.shape_cast %13 : vector<2x16x72xbf16> to vector<32x72xbf16>
    %c2_14 = arith.constant 2 : index
    %c0_15 = arith.constant 0 : index
    %c0_16 = arith.constant 0 : index
    %15 = vector.load %arg1[%c2_14, %c0_15, %c0_16] : memref<3x72x512xbf16, #tpu.memory_space<vmem>>, vector<1x72x512xbf16>
    %16 = vector.shape_cast %15 : vector<1x72x512xbf16> to vector<72x512xbf16>
    %cst_17 = arith.constant dense<0.000000e+00> : vector<32x512xf32>
    %17 = tpu.matmul %14, %16, %cst_17 {dimension_numbers = #tpu.dot_dimension_numbers<[1], [0], [0], [1], [0, 0, 1, 1], [], []>} : vector<32x72xbf16>, vector<72x512xbf16>, vector<32x512xf32> -> vector<32x512xf32>
    %18 = arith.addf %12, %17 : vector<32x512xf32>
    %cst_18 = arith.constant dense<0.000000e+00> : vector<512xf32>
    %19 = vector.multi_reduction <add>, %18, %cst_18 [0] : vector<32x512xf32> to vector<512xf32>
    %20 = vector.shape_cast %19 : vector<512xf32> to vector<1x512xf32>
    %21 = arith.mulf %18, %18 : vector<32x512xf32>
    %cst_19 = arith.constant dense<0.000000e+00> : vector<512xf32>
    %22 = vector.multi_reduction <add>, %21, %cst_19 [0] : vector<32x512xf32> to vector<512xf32>
    %23 = vector.shape_cast %22 : vector<512xf32> to vector<1x512xf32>
    %c0_20 = arith.constant 0 : index
    %c0_21 = arith.constant 0 : index
    %24 = vector.load %arg4[%c0_20, %c0_21] : memref<8x512xf32, #tpu.memory_space<vmem>>, vector<8x512xf32>
    %25 = vector.broadcast %20 : vector<1x512xf32> to vector<8x512xf32>
    %26 = arith.mulf %25, %24 : vector<8x512xf32>
    %cst_22 = arith.constant dense<0.000000e+00> : vector<8xf32>
    %27 = vector.multi_reduction <add>, %26, %cst_22 [1] : vector<8x512xf32> to vector<8xf32>
    %28 = vector.shape_cast %27 : vector<8xf32> to vector<8x1xf32>
    %29 = vector.broadcast %23 : vector<1x512xf32> to vector<8x512xf32>
    %30 = arith.mulf %29, %24 : vector<8x512xf32>
    %cst_23 = arith.constant dense<0.000000e+00> : vector<8xf32>
    %31 = vector.multi_reduction <add>, %30, %cst_23 [1] : vector<8x512xf32> to vector<8xf32>
    %32 = vector.shape_cast %31 : vector<8xf32> to vector<8x1xf32>
    %cst_24 = arith.constant 4.8828125E-4 : f32
    %33 = vector.broadcast %cst_24 : f32 to vector<8x1xf32>
    %34 = arith.mulf %28, %33 : vector<8x1xf32>
    %cst_25 = arith.constant 4.8828125E-4 : f32
    %35 = vector.broadcast %cst_25 : f32 to vector<8x1xf32>
    %36 = arith.mulf %32, %35 : vector<8x1xf32>
    %37 = arith.mulf %34, %34 : vector<8x1xf32>
    %38 = arith.subf %36, %37 : vector<8x1xf32>
    %cst_26 = arith.constant 9.99999974E-6 : f32
    %39 = vector.broadcast %cst_26 : f32 to vector<8x1xf32>
    %40 = arith.addf %38, %39 : vector<8x1xf32>
    %41 = math.rsqrt %40 : vector<8x1xf32>
    %c0_27 = arith.constant 0 : index
    %c0_28 = arith.constant 0 : index
    %42 = vector.load %arg2[%c0_27, %c0_28] : memref<8x1xf32, #tpu.memory_space<vmem>>, vector<8x1xf32>
    %43 = arith.mulf %41, %42 : vector<8x1xf32>
    %c0_29 = arith.constant 0 : index
    %c0_30 = arith.constant 0 : index
    %44 = vector.load %arg3[%c0_29, %c0_30] : memref<8x1xf32, #tpu.memory_space<vmem>>, vector<8x1xf32>
    %45 = arith.mulf %34, %43 : vector<8x1xf32>
    %46 = arith.subf %44, %45 : vector<8x1xf32>
    %47 = vector.broadcast %43 : vector<8x1xf32> to vector<8x512xf32>
    %48 = arith.mulf %47, %24 : vector<8x512xf32>
    %cst_31 = arith.constant dense<0.000000e+00> : vector<512xf32>
    %49 = vector.multi_reduction <add>, %48, %cst_31 [0] : vector<8x512xf32> to vector<512xf32>
    %50 = vector.shape_cast %49 : vector<512xf32> to vector<1x512xf32>
    %51 = vector.broadcast %46 : vector<8x1xf32> to vector<8x512xf32>
    %52 = arith.mulf %51, %24 : vector<8x512xf32>
    %cst_32 = arith.constant dense<0.000000e+00> : vector<512xf32>
    %53 = vector.multi_reduction <add>, %52, %cst_32 [0] : vector<8x512xf32> to vector<512xf32>
    %54 = vector.shape_cast %53 : vector<512xf32> to vector<1x512xf32>
    %55 = vector.broadcast %50 : vector<1x512xf32> to vector<32x512xf32>
    %56 = arith.mulf %18, %55 : vector<32x512xf32>
    %57 = vector.broadcast %54 : vector<1x512xf32> to vector<32x512xf32>
    %58 = arith.addf %56, %57 : vector<32x512xf32>
    %cst_33 = arith.constant 0.000000e+00 : f32
    %59 = vector.broadcast %cst_33 : f32 to vector<32x512xf32>
    %60 = arith.maximumf %58, %59 : vector<32x512xf32>
    %c0_34 = arith.constant 0 : index
    %c0_35 = arith.constant 0 : index
    %61 = vector.load %arg5[%c0_34, %c0_35] : memref<32x512xf32, #tpu.memory_space<vmem>>, vector<32x512xf32>
    tpu.vector_store %arg5[%c0_34, %c0_35], %60 {strides = array<i32>} : memref<32x512xf32, #tpu.memory_space<vmem>>, vector<32x512xf32>,
    return
  }
}

</mosaic_0001>

<bundles_post_ra>
// kernel: tpu_custom_call.1
= control target key start
LH: loop header
LB: loop body
LE: loop exit
PB: predicated region body
PF: predicated region fallthrough
CT: control target
= control target key end

     0   :  { %10 = vsyncpa [#allocation3], 0  ;;  %s1702_s0 = inlined_call_operand.vmem [shape: bf16[2,18,72], index: 0, kind: input, shape index: {}]   ;;  %s1703_s1 = inlined_call_operand.hbm [shape: bf16[3,72,512], index: 1, kind: input, shape index: {}]   ;;  %s1704_s2 = inlined_call_operand.vmem [shape: f32[8,1], index: 2, kind: input, shape index: {}]   ;;  %s1705_s3 = inlined_call_operand.vmem [shape: f32[8,1], index: 3, kind: input, shape index: {}]   ;;  %s1706_s4 = inlined_call_operand.vmem [shape: f32[8,512], index: 4, kind: input, shape index: {}]   ;;  %s1707_s5 = inlined_call_operand.hbm [shape: f32[32,512], index: 5, kind: output, shape index: {}]  }
   0x1   :  { %11 = vsyncpa [#allocation4], 0  ;;  %s18_s20 = sshll.u32 %s1703_s1, 4  ;;  %s1384_s21 = smov [#allocation2]   ;;  %s19_s20 = int_to_ptr.hbm [resolvable:$true] %s18_s20 }
   0x2   :  { %s20_s22 = sshll.u32 %s1384_s21, 4  ;;  %s1385_s23 = smov 256   ;;  %s21_s22 = int_to_ptr.vmem [resolvable:$true] %s20_s22 }
   0x3   :  { %s1386_s24 = smov 16  }
   0x4   :  { %26 = dma.hbm_to_vmem [thread:$0]  %s19_s20, 6912, %s21_s22, [#allocation3], %s1385_s23, %s1385_s23, %s1386_s24  }
   0x5   :  { %1380 = dma.done.wait [#allocation3], 6912  }
   0x6   :  { %1381 = vsyncadd [#allocation3], 4294960384  ;;  %v130_v0 = vld [vmem:[#allocation2 + $0x110] sm:$0xff]  ;;  %v131_v1 = vld [vmem:[#allocation2 + $0x118] sm:$0xff]  ;;  %vm235_vm0 = vcmask 1043456   ;;  %vm228_vm4 = vcmask 588800  }
   0x7   :  { %v188_v2 = vunpack.c.l.b16 %v130_v0  ;;  %v189_v3 = vunpack.c.h.b16 %v130_v0  ;;  %v190_v4 = vunpack.c.l.b16 %v131_v1  ;;  %v191_v5 = vunpack.c.h.b16 %v131_v1  ;;  %v1095_v6 = vld [vmem:[#allocation2 + $0xf0] sm:$0xf]  ;;  %v1303_v7 = vld [vmem:[#allocation2 + $0xfc] sm:$0xf0]  ;;  %v1301_v12 = vld [vmem:[#allocation2 + $0xf4] sm:$0xf] }
   0x8   :  { %v1097_v13 = vld [vmem:[#allocation2 + $0x100] sm:$0xf0]  ;;  %v1103_v14 = vld [vmem:[#allocation2 + $0xf8] sm:$0xf]  ;;  %v1304_v15 = vld [vmem:[#allocation2 + $0x104] sm:$0xf0]  ;;  %v1096_v26 = vor.u32 %v1303_v7, %v1095_v6 }
   0x9   :  { %v208_v8 = vpack.c.b16 %v188_v2, %v188_v2  ;;  %v209_v9 = vpack.c.b16 %v189_v3, %v189_v3  ;;  %v210_v10 = vpack.c.b16 %v190_v4, %v190_v4  ;;  %v211_v11 = vpack.c.b16 %v191_v5, %v191_v5  ;;  %v1302_v16 = vld [vmem:[#allocation2 + $0xfc] sm:$0xf]  ;;  %v1105_v17 = vld [vmem:[#allocation2 + $0x108] sm:$0xf0]  ;;  %v1079_v22 = vld [vmem:[#allocation2 + $0xd0] sm:$0xf] }
   0xa   :  { %v1299_v23 = vld [vmem:[#allocation2 + $0xdc] sm:$0xf0]  ;;  %v1297_v24 = vld [vmem:[#allocation2 + $0xd4] sm:$0xf]  ;;  %v1081_v25 = vld [vmem:[#allocation2 + $0xe0] sm:$0xf0]  ;;  %v1100_v27 = vor.u32 %v1301_v12, %v1097_v13  ;;  %v1104_v31 = vor.u32 %v1304_v15, %v1103_v14  ;;  %v1108_v32 = vor.u32 %v1302_v16, %v1105_v17 }
   0xb   :  { %v237_v18 = vsel %vm235_vm0, %v208_v8, 0  ;;  %v240_v19 = vsel %vm235_vm0, %v209_v9, 0  ;;  %v243_v20 = vsel %vm235_vm0, %v210_v10, 0  ;;  %v246_v21 = vsel %vm235_vm0, %v211_v11, 0  ;;  %v1087_v28 = vld [vmem:[#allocation2 + $0xd8] sm:$0xf] }
   0xc   :  { %251 = vmatpush.bf16.msra.mxu0 %v237_v18  ;;  %270 = vmatpush.bf16.msra.mxu1 %v240_v19  ;;  %v1300_v29 = vld [vmem:[#allocation2 + $0xe4] sm:$0xf0]  ;;  %v1298_v30 = vld [vmem:[#allocation2 + $0xdc] sm:$0xf]  ;;  %v1089_v33 = vld [vmem:[#allocation2 + $0xe8] sm:$0xf0]  ;;  %v1080_v42 = vor.u32 %v1299_v23, %v1079_v22  ;;  %v1084_v43 = vor.u32 %v1297_v24, %v1081_v25 }
   0xd   :  { %289 = vmatpush.bf16.msra.mxu2 %v243_v20  ;;  %308 = vmatpush.bf16.msra.mxu3 %v246_v21  ;;  %v1063_v34 = vld [vmem:[#allocation2 + $0xb0] sm:$0xf]  ;;  %v1295_v35 = vld [vmem:[#allocation2 + $0xbc] sm:$0xf0]  ;;  %v1293_v36 = vld [vmem:[#allocation2 + $0xb4] sm:$0xf]  ;;  %v1088_v45 = vor.u32 %v1300_v29, %v1087_v28  ;;  %v1092_v46 = vor.u32 %v1298_v30, %v1089_v33 }
   0xe   :  { %v1065_v37 = vld [vmem:[#allocation2 + $0xc0] sm:$0xf0]  ;;  %v1428_v38 = vld [vmem:[#allocation2 + $0xb8] sm:$0xf]  ;;  %v1430_v39 = vld [vmem:[#allocation2 + $0xc4] sm:$0xf0]  ;;  %v1064_v50 = vor.u32 %v1295_v35, %v1063_v34 }
   0xf   :  { %v1432_v40 = vld [vmem:[#allocation2 + $0xbc] sm:$0xf]  ;;  %v1073_v41 = vld [vmem:[#allocation2 + $0xc8] sm:$0xf0]  ;;  %v1434_v44 = vld [vmem:[#allocation2 + $0x90] sm:$0xf]  ;;  %v1068_v51 = vor.u32 %v1293_v36, %v1065_v37  ;;  %v1072_v52 = vor.u32 %v1430_v39, %v1428_v38 }
  0x10   :  { %252 = vmatpush.bf16.msra.mxu0 %v1096_v26  ;;  %271 = vmatpush.bf16.msra.mxu1 %v1100_v27  ;;  %vm62_vm1 = vsmask.f32 3328  ;;  %vm63_vm2 = vsmask.f32 7440  ;;  %v1436_v47 = vld [vmem:[#allocation2 + $0x9c] sm:$0xf0]  ;;  %v1076_v53 = vor.u32 %v1432_v40, %v1073_v41 }
  0x11   :  { %290 = vmatpush.bf16.msra.mxu2 %v1104_v31  ;;  %309 = vmatpush.bf16.msra.mxu3 %v1108_v32  ;;  %v1438_v48 = vld [vmem:[#allocation2 + $0x94] sm:$0xf]  ;;  %v1440_v49 = vld [vmem:[#allocation2 + $0xa0] sm:$0xf0]  ;;  %v38_v54 = vld [vmem:[%s1702_s0] sm:$0xf]  ;;  %v1048_v0 = vor.u32 %v1436_v47, %v1434_v44 }
  0x12   :  { %v1451_v55 = vld [vmem:[%s1702_s0 + $0x4] sm:$0xf]  ;;  %v1456_v56 = vld [vmem:[%s1702_s0 + $0x8] sm:$0x1]  ;;  %v1458_v57 = vld [vmem:[#allocation2 + $0x98] sm:$0xf]  ;;  %v1052_v11 = vor.u32 %v1438_v48, %v1440_v49 }
  0x13   :  { %v66_v58 = vshrl.u32 %v38_v54, 16  ;;  %v69_v59 = vshll.u32 %v38_v54, 16  ;;  %v75_v60 = vshll.u32 %v1451_v55, 16  ;;  %v79_v61 = vshrl.u32 %v1451_v55, 16  ;;  %v59_v62 = vld [vmem:[#allocation2 + $0x88] sm:$0xff]  ;;  %v58_v63 = vld [vmem:[#allocation2 + $0x80] sm:$0xff]  ;;  %vm1470_vm3 = vmor %vm62_vm1, %vm63_vm2 }
  0x14   :  { %253 = vmatpush.bf16.msra.mxu0 %v1080_v42  ;;  %272 = vmatpush.bf16.msra.mxu1 %v1084_v43  ;;  %v1292_v1 = vld [vmem:[#allocation2 + $0xa4] sm:$0xf0]  ;;  %v1290_v2 = vld [vmem:[#allocation2 + $0x9c] sm:$0xf]  ;;  %v85_v3 = vshll.u32 %v1456_v56, 16  ;;  %v386_v4 = vunpack.c.l.b16 %v59_v62  ;;  %v387_v5 = vunpack.c.h.b16 %v59_v62  ;;  %v384_v14 = vunpack.c.l.b16 %v58_v63  ;;  %s1032_s30 = sshll.u32 %s1707_s5, 4  ;;  %s1033_s30 = int_to_ptr.hbm [resolvable:$true] %s1032_s30 }
  0x15   :  { %291 = vmatpush.bf16.msra.mxu2 %v1088_v45  ;;  %310 = vmatpush.bf16.msra.mxu3 %v1092_v46  ;;  %v1057_v6 = vld [vmem:[#allocation2 + $0xa8] sm:$0xf0]  ;;  %v68_v7 = vrot.slane %v66_v58, 4  ;;  %v71_v8 = vrot.slane %v69_v59, 5  ;;  %v77_v9 = vrot.slane %v75_v60, 5  ;;  %v81_v10 = vrot.slane %v79_v61, 4 }
  0x16   :  { %v406_v12 = vpack.c.b16 %v386_v4, %v386_v4  ;;  %v407_v13 = vpack.c.b16 %v387_v5, %v387_v5  ;;  %v87_v17 = vrot.slane %v85_v3, 5  ;;  %v385_v18 = vunpack.c.h.b16 %v58_v63  ;;  %v1474_v23 = vld [vmem:[#allocation2 + $0x68] sm:$0xf]  ;;  %v1288_v24 = vld [vmem:[#allocation2 + $0x74] sm:$0xf0]  ;;  %s1389_s6 = smov 512  }
  0x17   :  { %v72_v15 = vor.u32 %v71_v8, %v68_v7  ;;  %v82_v16 = vor.u32 %v81_v10, %v77_v9  ;;  %v1056_v19 = vor.u32 %v1292_v1, %v1458_v57  ;;  %v1060_v20 = vor.u32 %v1290_v2, %v1057_v6  ;;  %v1286_v29 = vld [vmem:[#allocation2 + $0x6c] sm:$0xf]  ;;  %v1185_v30 = vld [vmem:[#allocation2 + $0x78] sm:$0xf0]  ;;  %v1175_v33 = vld [vmem:[#allocation2 + $0x60] sm:$0xf] }
  0x18   :  { %254 = vmatpush.bf16.msra.mxu0 %v1064_v50  ;;  %273 = vmatpush.bf16.msra.mxu1 %v1068_v51  ;;  %v404_v22 = vpack.c.b16 %v384_v14, %v384_v14  ;;  %v437_v27 = vsel %vm235_vm0, %v406_v12, 0  ;;  %v405_v28 = vpack.c.b16 %v385_v18, %v385_v18  ;;  %v440_v31 = vsel %vm235_vm0, %v407_v13, 0  ;;  %v40_v34 = vld [vmem:[%s1702_s0 + $0xc] sm:$0xf]  ;;  %v1485_v35 = vld [vmem:[%s1702_s0 + $0x10] sm:$0xf] }
  0x19   :  { %292 = vmatpush.bf16.msra.mxu2 %v1072_v52  ;;  %311 = vmatpush.bf16.msra.mxu3 %v1076_v53  ;;  %v73_v25 = vrot.slane %v72_v15, 4  ;;  %v83_v26 = vrot.slane %v82_v16, 4  ;;  %v1287_v39 = vld [vmem:[#allocation2 + $0x6c] sm:$0xf0]  ;;  %v1495_v40 = vld [vmem:[%s1702_s0 + $0x14] sm:$0x1]  ;;  %v1184_v48 = vor.u32 %v1288_v24, %v1474_v23  ;;  %v1188_v54 = vor.u32 %v1286_v29, %v1185_v30 }
  0x1a   :  { %v431_v32 = vsel %vm235_vm0, %v404_v22, 0  ;;  %v434_v38 = vsel %vm235_vm0, %v405_v28, 0  ;;  %v90_v41 = vshrl.u32 %v40_v34, 16  ;;  %v1285_v44 = vld [vmem:[#allocation2 + $0x64] sm:$0xf]  ;;  %v93_v46 = vshll.u32 %v40_v34, 16 }
  0x1b   :  { %v78_v36 = vsel %vm1470_vm3, %v73_v25, %v77_v9  ;;  %v88_v37 = vsel %vm1470_vm3, %v83_v26, %v87_v17  ;;  %v1177_v45 = vld [vmem:[#allocation2 + $0x70] sm:$0xf0]  ;;  %v99_v47 = vshll.u32 %v1485_v35, 16  ;;  %v1167_v49 = vld [vmem:[#allocation2 + $0x48] sm:$0xf]  ;;  %v103_v51 = vshrl.u32 %v1485_v35, 16 }
  0x1c   :  { %255 = vmatpush.bf16.msra.mxu0 %v1048_v0  ;;  %274 = vmatpush.bf16.msra.mxu1 %v1052_v11  ;;  %v132_v42 = vunpack.c.l.b16 %v78_v36  ;;  %v133_v43 = vunpack.c.l.b16 %v88_v37  ;;  %v92_v50 = vrot.slane %v90_v41, 4  ;;  %v109_v52 = vshll.u32 %v1495_v40, 16  ;;  %v1284_v57 = vld [vmem:[#allocation2 + $0x54] sm:$0xf0]  ;;  %v1282_v58 = vld [vmem:[#allocation2 + $0x4c] sm:$0xf] }
  0x1d   :  { %293 = vmatpush.bf16.msra.mxu2 %v1056_v19  ;;  %312 = vmatpush.bf16.msra.mxu3 %v1060_v20  ;;  %v95_v59 = vrot.slane %v93_v46, 5  ;;  %v101_v60 = vrot.slane %v99_v47, 5  ;;  %v1176_v61 = vor.u32 %v1287_v39, %v1175_v33  ;;  %v1180_v62 = vor.u32 %v1285_v44, %v1177_v45  ;;  %v1169_v63 = vld [vmem:[#allocation2 + $0x58] sm:$0xf0]  ;;  %v1159_v1 = vld [vmem:[#allocation2 + $0x40] sm:$0xf] }
  0x1e   :  { %v136_v53 = vpack.c.b16 %v133_v43, %v132_v42  ;;  %v105_v0 = vrot.slane %v103_v51, 4  ;;  %v1283_v3 = vld [vmem:[#allocation2 + $0x4c] sm:$0xf0]  ;;  %v1281_v4 = vld [vmem:[#allocation2 + $0x44] sm:$0xf]  ;;  %v111_v7 = vrot.slane %v109_v52, 5  ;;  %v1168_v10 = vor.u32 %v1284_v57, %v1167_v49 }
  0x1f   :  { %v96_v2 = vor.u32 %v95_v59, %v92_v50  ;;  %v1161_v5 = vld [vmem:[#allocation2 + $0x50] sm:$0xf0]  ;;  %v1151_v8 = vld [vmem:[#allocation2 + $0x28] sm:$0xf]  ;;  %v1280_v9 = vld [vmem:[#allocation2 + $0x34] sm:$0xf0]  ;;  %v1172_v11 = vor.u32 %v1282_v58, %v1169_v63  ;;  %v1160_v16 = vor.u32 %v1283_v3, %v1159_v1 }
  0x20   :  { %445 = vmatpush.bf16.msrb.mxu0 %v431_v32  ;;  %464 = vmatpush.bf16.msrb.mxu1 %v434_v38  ;;  %v106_v6 = vor.u32 %v105_v0, %v101_v60  ;;  %v1278_v13 = vld [vmem:[#allocation2 + $0x2c] sm:$0xf]  ;;  %v1153_v14 = vld [vmem:[#allocation2 + $0x38] sm:$0xf0]  ;;  %v1164_v17 = vor.u32 %v1281_v4, %v1161_v5  ;;  %v1143_v18 = vld [vmem:[#allocation2 + $0x20] sm:$0xf] }
  0x21   :  { %483 = vmatpush.bf16.msrb.mxu2 %v437_v27  ;;  %502 = vmatpush.bf16.msrb.mxu3 %v440_v31  ;;  %v97_v12 = vrot.slane %v96_v2, 4  ;;  %v1279_v19 = vld [vmem:[#allocation2 + $0x2c] sm:$0xf0]  ;;  %v1277_v20 = vld [vmem:[#allocation2 + $0x24] sm:$0xf]  ;;  %v559_v23 = vld [vmem:[#allocation2 + $0x1a8] sm:$0xff]  ;;  %v1152_v27 = vor.u32 %v1280_v9, %v1151_v8  ;;  %v1156_v28 = vor.u32 %v1278_v13, %v1153_v14 }
  0x22   :  { %1109 = vmatmul.msk.bf16.vlgmr.msra.gmra.mxu0 %vm228_vm4, %v136_v53  ;;  %1111 = vmatmul.msk.bf16.vlgmr.msra.gmra.mxu1 %vm228_vm4, %v136_v53  ;;  %v107_v15 = vrot.slane %v106_v6, 4  ;;  %v1145_v22 = vld [vmem:[#allocation2 + $0x30] sm:$0xf0]  ;;  %v558_v26 = vld [vmem:[#allocation2 + $0x1a0] sm:$0xff]  ;;  %v1135_v29 = vld [vmem:[#allocation2 + $0x8] sm:$0xf]  ;;  %v1144_v32 = vor.u32 %v1279_v19, %v1143_v18  ;;  %v618_v38 = vunpack.c.l.b16 %v559_v23  ;;  %v619_v39 = vunpack.c.h.b16 %v559_v23 }
  0x23   :  { %1113 = vmatmul.msk.bf16.vlgmr.msra.gmra.mxu2 %vm228_vm4, %v136_v53  ;;  %1115 = vmatmul.msk.bf16.vlgmr.msra.gmra.mxu3 %vm228_vm4, %v136_v53  ;;  %v102_v24 = vsel %vm1470_vm3, %v97_v12, %v101_v60  ;;  %v1276_v30 = vld [vmem:[#allocation2 + $0x14] sm:$0xf0]  ;;  %v1274_v31 = vld [vmem:[#allocation2 + $0xc] sm:$0xf]  ;;  %v1148_v33 = vor.u32 %v1277_v20, %v1145_v22  ;;  %v1137_v34 = vld [vmem:[#allocation2 + $0x18] sm:$0xf0]  ;;  %v616_v44 = vunpack.c.l.b16 %v558_v26  ;;  %v617_v45 = vunpack.c.h.b16 %v558_v26 }
  0x24   :  { %446 = vmatpush.bf16.msrb.mxu0 %v1176_v61  ;;  %465 = vmatpush.bf16.msrb.mxu1 %v1180_v62  ;;  %v112_v25 = vsel %vm1470_vm3, %v107_v15, %v111_v7  ;;  %v1127_v36 = vld [vmem:[#allocation2] sm:$0xf]  ;;  %v1275_v37 = vld [vmem:[#allocation2 + $0xc] sm:$0xf0]  ;;  %v134_v41 = vunpack.c.l.b16 %v102_v24  ;;  %v1273_v42 = vld [vmem:[#allocation2 + $0x4] sm:$0xf]  ;;  %v1136_v46 = vor.u32 %v1276_v30, %v1135_v29  ;;  %v1140_v47 = vor.u32 %v1274_v31, %v1137_v34 }
  0x25   :  { %484 = vmatpush.bf16.msrb.mxu2 %v1184_v48  ;;  %503 = vmatpush.bf16.msrb.mxu3 %v1188_v54  ;;  %v135_v21 = vunpack.c.l.b16 %v112_v25  ;;  %v1129_v43 = vld [vmem:[#allocation2 + $0x10] sm:$0xf0]  ;;  %v1128_v48 = vor.u32 %v1275_v37, %v1127_v36  ;;  %v638_v50 = vpack.c.b16 %v618_v38, %v618_v38  ;;  %v639_v51 = vpack.c.b16 %v619_v39, %v619_v39  ;;  %v1257_v57 = vld [vmem:[#allocation2 + $0x188] sm:$0xf]  ;;  %v1320_v58 = vld [vmem:[#allocation2 + $0x194] sm:$0xf0] }
  0x26   :  { %v1132_v49 = vor.u32 %v1273_v42, %v1129_v43  ;;  %v636_v53 = vpack.c.b16 %v616_v44, %v616_v44  ;;  %v637_v54 = vpack.c.b16 %v617_v45, %v617_v45  ;;  %v1318_v59 = vld [vmem:[#allocation2 + $0x18c] sm:$0xf]  ;;  %v1259_v60 = vld [vmem:[#allocation2 + $0x198] sm:$0xf0]  ;;  %v1249_v63 = vld [vmem:[#allocation2 + $0x180] sm:$0xf]  ;;  %v1258_v5 = vor.u32 %v1320_v58, %v1257_v57 }
  0x27   :  { %v137_v52 = vpack.c.b16 %v135_v21, %v134_v41  ;;  %v669_v61 = vsel %vm235_vm0, %v638_v50, 0  ;;  %v672_v62 = vsel %vm235_vm0, %v639_v51, 0  ;;  %v1319_v0 = vld [vmem:[#allocation2 + $0x18c] sm:$0xf0]  ;;  %v1317_v3 = vld [vmem:[#allocation2 + $0x184] sm:$0xf]  ;;  %v1262_v6 = vor.u32 %v1318_v59, %v1259_v60 }
  0x28   :  { %447 = vmatpush.bf16.msrb.mxu0 %v1160_v16  ;;  %466 = vmatpush.bf16.msrb.mxu1 %v1164_v17  ;;  %v663_v1 = vsel %vm235_vm0, %v636_v53, 0  ;;  %v666_v2 = vsel %vm235_vm0, %v637_v54, 0  ;;  %v1251_v4 = vld [vmem:[#allocation2 + $0x190] sm:$0xf0]  ;;  %v1241_v7 = vld [vmem:[#allocation2 + $0x168] sm:$0xf]  ;;  %v1250_v9 = vor.u32 %v1319_v0, %v1249_v63 }
  0x29   :  { %485 = vmatpush.bf16.msrb.mxu2 %v1168_v10  ;;  %504 = vmatpush.bf16.msrb.mxu3 %v1172_v11  ;;  %v1316_v8 = vld [vmem:[#allocation2 + $0x174] sm:$0xf0]  ;;  %v1254_v10 = vor.u32 %v1317_v3, %v1251_v4  ;;  %v1314_v11 = vld [vmem:[#allocation2 + $0x16c] sm:$0xf]  ;;  %v1243_v12 = vld [vmem:[#allocation2 + $0x178] sm:$0xf0] }
  0x2a   :  { %v1233_v13 = vld [vmem:[#allocation2 + $0x160] sm:$0xf]  ;;  %v1315_v14 = vld [vmem:[#allocation2 + $0x16c] sm:$0xf0]  ;;  %v1313_v15 = vld [vmem:[#allocation2 + $0x164] sm:$0xf]  ;;  %v1242_v19 = vor.u32 %v1316_v8, %v1241_v7  ;;  %v1246_v20 = vor.u32 %v1314_v11, %v1243_v12 }
  0x2b   :  { %v1235_v16 = vld [vmem:[#allocation2 + $0x170] sm:$0xf0]  ;;  %v1225_v17 = vld [vmem:[#allocation2 + $0x148] sm:$0xf]  ;;  %v1312_v18 = vld [vmem:[#allocation2 + $0x154] sm:$0xf0]  ;;  %v1234_v25 = vor.u32 %v1315_v14, %v1233_v13 }
  0x2c   :  { %448 = vmatpush.bf16.msrb.mxu0 %v1144_v32  ;;  %467 = vmatpush.bf16.msrb.mxu1 %v1148_v33  ;;  %v1310_v22 = vld [vmem:[#allocation2 + $0x14c] sm:$0xf]  ;;  %v1227_v23 = vld [vmem:[#allocation2 + $0x158] sm:$0xf0]  ;;  %v1217_v24 = vld [vmem:[#allocation2 + $0x140] sm:$0xf]  ;;  %v1238_v26 = vor.u32 %v1313_v15, %v1235_v16  ;;  %v1226_v36 = vor.u32 %v1312_v18, %v1225_v17 }
  0x2d   :  { %486 = vmatpush.bf16.msrb.mxu2 %v1152_v27  ;;  %505 = vmatpush.bf16.msrb.mxu3 %v1156_v28  ;;  %v1311_v27 = vld [vmem:[#allocation2 + $0x14c] sm:$0xf0]  ;;  %v1309_v28 = vld [vmem:[#allocation2 + $0x144] sm:$0xf]  ;;  %v518_v29 = vld [vmem:[%s1702_s0] sm:$0xe]  ;;  %v1230_v37 = vor.u32 %v1310_v22, %v1227_v23 }
  0x2e   :  { %v1219_v30 = vld [vmem:[#allocation2 + $0x150] sm:$0xf0]  ;;  %vm524_vm5 = vcmask 1042432   ;;  %vm525_vm6 = vcmask 1046532   ;;  %v1197_v31 = vrot.slane %v518_v29, 9  ;;  %v532_v32 = vrot.slane %v1456_v56, 5 }
  0x2f   :  { %vm1521_vm7 = vmor %vm524_vm5, %vm525_vm6  ;;  %v529_v34 = vrot.slane %v1451_v55, 5  ;;  %v1209_v38 = vld [vmem:[#allocation2 + $0x128] sm:$0xf]  ;;  %v1308_v39 = vld [vmem:[#allocation2 + $0x134] sm:$0xf0]  ;;  %v1218_v56 = vor.u32 %v1311_v27, %v1217_v24  ;;  %v1222_v42 = vor.u32 %v1309_v28, %v1219_v30  ;;  %v536_v60 = vrot.slane %v1485_v35, 5 }
  0x30   :  { %449 = vmatpush.bf16.msrb.mxu0 %v1128_v48  ;;  %468 = vmatpush.bf16.msrb.mxu1 %v1132_v49  ;;  %v1306_v41 = vld [vmem:[#allocation2 + $0x12c] sm:$0xf]  ;;  %v1271_v21 = vld [vmem:[%s1702_s0] sm:$0xff]  ;;  %v1211_v43 = vld [vmem:[#allocation2 + $0x138] sm:$0xf0]  ;;  %v1210_v51 = vor.u32 %v1308_v39, %v1209_v38  ;;  %s1390_s7 = smov 32  }
  0x31   :  { %487 = vmatpush.bf16.msrb.mxu2 %v1136_v46  ;;  %506 = vmatpush.bf16.msrb.mxu3 %v1140_v47  ;;  %v1201_v44 = vld [vmem:[#allocation2 + $0x120] sm:$0xf]  ;;  %v530_v55 = vsel %vm1521_vm7, %v1197_v31, %v529_v34  ;;  %v531_v45 = vrot.slane %v529_v34, 4  ;;  %v1307_v46 = vld [vmem:[#allocation2 + $0x12c] sm:$0xf0]  ;;  %v538_v63 = vrot.slane %v536_v60, 4 }
  0x32   :  { %1110 = vmatmul.msk.bf16.gmra.mxu0 %vm228_vm4, %v137_v52  ;;  %1112 = vmatmul.msk.bf16.gmra.mxu1 %vm228_vm4, %v137_v52  ;;  %v1305_v47 = vld [vmem:[#allocation2 + $0x124] sm:$0xf]  ;;  %v1203_v48 = vld [vmem:[#allocation2 + $0x130] sm:$0xf0]  ;;  %v560_v49 = vunpack.c.l.b16 %v530_v55  ;;  %v1202_v54 = vor.u32 %v1307_v46, %v1201_v44  ;;  %v519_v59 = vld [vmem:[%s1702_s0 + $0xc] sm:$0xe] }
  0x33   :  { %1114 = vmatmul.msk.bf16.gmra.mxu2 %vm228_vm4, %v137_v52  ;;  %1116 = vmatmul.msk.bf16.gmra.mxu3 %vm228_vm4, %v137_v52  ;;  %v533_v50 = vsel %vm1521_vm7, %v531_v45, %v532_v32  ;;  %v1214_v52 = vor.u32 %v1306_v41, %v1211_v43  ;;  %v1206_v57 = vor.u32 %v1305_v47, %v1203_v48  ;;  %v1272_v35 = vld [vmem:[%s1702_s0 + $0xc] sm:$0xff] }
  0x34   :  { %677 = vmatpush.bf16.msra.mxu0 %v663_v1  ;;  %696 = vmatpush.bf16.msra.mxu1 %v666_v2  ;;  %v561_v53 = vunpack.c.l.b16 %v533_v50 }
  0x35   :  { %715 = vmatpush.bf16.msra.mxu2 %v669_v61  ;;  %734 = vmatpush.bf16.msra.mxu3 %v672_v62  ;;  %v539_v61 = vrot.slane %v1495_v40, 5  ;;  %v1198_v62 = vrot.slane %v519_v59, 9 }
  0x36   :  { %v564_v58 = vpack.c.b16 %v561_v53, %v560_v49 }
  0x37   :  { %v537_v0 = vsel %vm1521_vm7, %v1198_v62, %v536_v60  ;;  %v540_v1 = vsel %vm1521_vm7, %v538_v63, %v539_v61 }
  0x38   :  { %678 = vmatpush.bf16.msra.mxu0 %v1250_v9  ;;  %697 = vmatpush.bf16.msra.mxu1 %v1254_v10  ;;  %v562_v2 = vunpack.c.l.b16 %v537_v0  ;;  %v563_v3 = vunpack.c.l.b16 %v540_v1 }
  0x39   :  { %716 = vmatpush.bf16.msra.mxu2 %v1258_v5  ;;  %735 = vmatpush.bf16.msra.mxu3 %v1262_v6 }
  0x3a   :  { %v565_v4 = vpack.c.b16 %v563_v3, %v562_v2 }
  0x3c   :  { %679 = vmatpush.bf16.msra.mxu0 %v1234_v25  ;;  %698 = vmatpush.bf16.msra.mxu1 %v1238_v26 }
  0x3d   :  { %717 = vmatpush.bf16.msra.mxu2 %v1242_v19  ;;  %736 = vmatpush.bf16.msra.mxu3 %v1246_v20 }
  0x40   :  { %680 = vmatpush.bf16.msra.mxu0 %v1218_v56  ;;  %699 = vmatpush.bf16.msra.mxu1 %v1222_v42 }
  0x41   :  { %718 = vmatpush.bf16.msra.mxu2 %v1226_v36  ;;  %737 = vmatpush.bf16.msra.mxu3 %v1230_v37 }
  0x42   :  { %1189 = vmatmul.msk.bf16.vlgmr.msrb.gmra.mxu0 %vm228_vm4, %v1271_v21  ;;  %1191 = vmatmul.msk.bf16.vlgmr.msrb.gmra.mxu1 %vm228_vm4, %v1271_v21 }
  0x43   :  { %1193 = vmatmul.msk.bf16.vlgmr.msrb.gmra.mxu2 %vm228_vm4, %v1271_v21  ;;  %1195 = vmatmul.msk.bf16.vlgmr.msrb.gmra.mxu3 %vm228_vm4, %v1271_v21 }
  0x44   :  { %681 = vmatpush.bf16.msra.mxu0 %v1202_v54  ;;  %700 = vmatpush.bf16.msra.mxu1 %v1206_v57 }
  0x45   :  { %719 = vmatpush.bf16.msra.mxu2 %v1210_v51  ;;  %738 = vmatpush.bf16.msra.mxu3 %v1214_v52 }
  0x52   :  { %1190 = vmatmul.msk.bf16.gmra.mxu0 %vm228_vm4, %v1272_v35  ;;  %1192 = vmatmul.msk.bf16.gmra.mxu1 %vm228_vm4, %v1272_v35 }
  0x53   :  { %1194 = vmatmul.msk.bf16.gmra.mxu2 %vm228_vm4, %v1272_v35  ;;  %1196 = vmatmul.msk.bf16.gmra.mxu3 %vm228_vm4, %v1272_v35 }
  0x62   :  { %1263 = vmatmul.msk.bf16.vlgmr.msra.gmra.mxu0 %vm228_vm4, %v564_v58  ;;  %1265 = vmatmul.msk.bf16.vlgmr.msra.gmra.mxu1 %vm228_vm4, %v564_v58 }
  0x63   :  { %1267 = vmatmul.msk.bf16.vlgmr.msra.gmra.mxu2 %vm228_vm4, %v564_v58  ;;  %1269 = vmatmul.msk.bf16.vlgmr.msra.gmra.mxu3 %vm228_vm4, %v564_v58 }
  0x72   :  { %1264 = vmatmul.msk.bf16.gmra.mxu0 %vm228_vm4, %v565_v4  ;;  %1266 = vmatmul.msk.bf16.gmra.mxu1 %vm228_vm4, %v565_v4 }
  0x73   :  { %1268 = vmatmul.msk.bf16.gmra.mxu2 %vm228_vm4, %v565_v4  ;;  %1270 = vmatmul.msk.bf16.gmra.mxu3 %vm228_vm4, %v565_v4 }
  0x9f   :  { %v257_v40 = vpop.f32.mrf.mxu0  ;;  %v276_v5 = vpop.f32.mrf.mxu1 }
  0xa6   :  { %v295_v6 = vpop.f32.mrf.mxu2  ;;  %v314_v7 = vpop.f32.mrf.mxu3 }
  0xa7   :  { %v259_v8 = vpop.f32.mrf.mxu0  ;;  %v278_v9 = vpop.f32.mrf.mxu1 }
  0xae   :  { %v297_v10 = vpop.f32.mrf.mxu2  ;;  %v316_v11 = vpop.f32.mrf.mxu3 }
  0xaf   :  { %v262_v12 = vpop.f32.mrf.mxu0  ;;  %v281_v13 = vpop.f32.mrf.mxu1 }
  0xb6   :  { %v300_v14 = vpop.f32.mrf.mxu2  ;;  %v319_v15 = vpop.f32.mrf.mxu3 }
  0xb7   :  { %v264_v16 = vpop.f32.mrf.mxu0  ;;  %v283_v17 = vpop.f32.mrf.mxu1 }
  0xbe   :  { %v302_v18 = vpop.f32.mrf.mxu2  ;;  %v321_v19 = vpop.f32.mrf.mxu3 }
  0xbf   :  { %v451_v20 = vpop.f32.mrf.mxu0  ;;  %v470_v22 = vpop.f32.mrf.mxu1 }
  0xc0   :  { %v452_v55 = vadd.f32 %v451_v20, %v257_v40  ;;  %v471_v45 = vadd.f32 %v470_v22, %v276_v5 }
  0xc6   :  { %v489_v23 = vpop.f32.mrf.mxu2  ;;  %v508_v24 = vpop.f32.mrf.mxu3 }
  0xc7   :  { %v453_v25 = vpop.f32.mrf.mxu0  ;;  %v472_v26 = vpop.f32.mrf.mxu1  ;;  %v490_v54 = vadd.f32 %v489_v23, %v295_v6  ;;  %v509_v57 = vadd.f32 %v508_v24, %v314_v7 }
  0xc8   :  { %v454_v43 = vadd.f32 %v453_v25, %v259_v8  ;;  %v473_v44 = vadd.f32 %v472_v26, %v278_v9 }
  0xce   :  { %v491_v27 = vpop.f32.mrf.mxu2  ;;  %v510_v28 = vpop.f32.mrf.mxu3 }
  0xcf   :  { %v456_v29 = vpop.f32.mrf.mxu0  ;;  %v475_v30 = vpop.f32.mrf.mxu1  ;;  %v492_v60 = vadd.f32 %v491_v27, %v297_v10  ;;  %v511_v61 = vadd.f32 %v510_v28, %v316_v11 }
  0xd0   :  { %v457_v48 = vadd.f32 %v456_v29, %v262_v12  ;;  %v476_v49 = vadd.f32 %v475_v30, %v281_v13 }
  0xd6   :  { %v494_v31 = vpop.f32.mrf.mxu2  ;;  %v513_v32 = vpop.f32.mrf.mxu3 }
  0xd7   :  { %v458_v33 = vpop.f32.mrf.mxu0  ;;  %v477_v34 = vpop.f32.mrf.mxu1  ;;  %v495_v0 = vadd.f32 %v494_v31, %v300_v14  ;;  %v514_v1 = vadd.f32 %v513_v32, %v319_v15 }
  0xd8   :  { %v459_v4 = vadd.f32 %v458_v33, %v264_v16  ;;  %v478_v35 = vadd.f32 %v477_v34, %v283_v17 }
  0xde   :  { %v496_v36 = vpop.f32.mrf.mxu2  ;;  %v515_v37 = vpop.f32.mrf.mxu3 }
  0xdf   :  { %v683_v38 = vpop.f32.mrf.mxu0  ;;  %v702_v39 = vpop.f32.mrf.mxu1  ;;  %v497_v6 = vadd.f32 %v496_v36, %v302_v18  ;;  %v516_v7 = vadd.f32 %v515_v37, %v321_v19 }
  0xe0   :  { %v1565_v58 = vadd.f32 %v683_v38, %v452_v55  ;;  %v1567_v59 = vadd.f32 %v702_v39, %v471_v45 }
  0xe2   :  { %v802_v8 = vmul.f32 %v1565_v58, %v1565_v58  ;;  %v803_v9 = vmul.f32 %v1567_v59, %v1567_v59 }
  0xe6   :  { %v721_v41 = vpop.f32.mrf.mxu2  ;;  %v740_v21 = vpop.f32.mrf.mxu3 }
  0xe7   :  { %v685_v56 = vpop.f32.mrf.mxu0  ;;  %v704_v42 = vpop.f32.mrf.mxu1  ;;  %v1573_v2 = vadd.f32 %v721_v41, %v490_v54  ;;  %v1575_v3 = vadd.f32 %v740_v21, %v509_v57 }
  0xe8   :  { %v1561_v50 = vadd.f32 %v685_v56, %v454_v43  ;;  %v1563_v51 = vadd.f32 %v704_v42, %v473_v44 }
  0xe9   :  { %v804_v14 = vmul.f32 %v1573_v2, %v1573_v2  ;;  %v805_v15 = vmul.f32 %v1575_v3, %v1575_v3 }
  0xea   :  { %v806_v40 = vmul.f32 %v1561_v50, %v1561_v50  ;;  %v807_v5 = vmul.f32 %v1563_v51, %v1563_v51  ;;  %v766_v16 = vadd.f32 %v1561_v50, %v1565_v58  ;;  %v775_v17 = vadd.f32 %v1563_v51, %v1567_v59 }
  0xec   :  { %v818_v20 = vadd.f32 %v806_v40, %v802_v8  ;;  %v827_v22 = vadd.f32 %v807_v5, %v803_v9 }
  0xee   :  { %v723_v46 = vpop.f32.mrf.mxu2  ;;  %v742_v47 = vpop.f32.mrf.mxu3 }
  0xef   :  { %v688_v52 = vpop.f32.mrf.mxu0  ;;  %v707_v53 = vpop.f32.mrf.mxu1  ;;  %v1585_v10 = vadd.f32 %v723_v46, %v492_v60  ;;  %v1587_v11 = vadd.f32 %v742_v47, %v511_v61 }
  0xf0   :  { %v1569_v62 = vadd.f32 %v688_v52, %v457_v48  ;;  %v1571_v63 = vadd.f32 %v707_v53, %v476_v49 }
  0xf1   :  { %v808_v31 = vmul.f32 %v1585_v10, %v1585_v10  ;;  %v809_v32 = vmul.f32 %v1587_v11, %v1587_v11  ;;  %v784_v41 = vadd.f32 %v1585_v10, %v1573_v2  ;;  %v793_v21 = vadd.f32 %v1587_v11, %v1575_v3 }
  0xf2   :  { %v810_v12 = vmul.f32 %v1569_v62, %v1569_v62  ;;  %v811_v13 = vmul.f32 %v1571_v63, %v1571_v63  ;;  %v767_v27 = vadd.f32 %v766_v16, %v1569_v62  ;;  %v776_v28 = vadd.f32 %v775_v17, %v1571_v63 }
  0xf3   :  { %v836_v46 = vadd.f32 %v808_v31, %v804_v14  ;;  %v845_v47 = vadd.f32 %v809_v32, %v805_v15 }
  0xf4   :  { %v819_v33 = vadd.f32 %v818_v20, %v810_v12  ;;  %v828_v34 = vadd.f32 %v827_v22, %v811_v13 }
  0xf6   :  { %v726_v18 = vpop.f32.mrf.mxu2  ;;  %v745_v19 = vpop.f32.mrf.mxu3 }
  0xf7   :  { %v1601_v23 = vadd.f32 %v726_v18, %v495_v0  ;;  %v1603_v24 = vadd.f32 %v745_v19, %v514_v1  ;;  %v690_v25 = vpop.f32.mrf.mxu0  ;;  %v709_v26 = vpop.f32.mrf.mxu1 }
  0xf8   :  { %v1607_v29 = vadd.f32 %v690_v25, %v459_v4  ;;  %v1609_v30 = vadd.f32 %v709_v26, %v478_v35 }
  0xf9   :  { %v812_v56 = vmul.f32 %v1601_v23, %v1601_v23  ;;  %v813_v42 = vmul.f32 %v1603_v24, %v1603_v24  ;;  %v785_v48 = vadd.f32 %v784_v41, %v1601_v23  ;;  %v794_v49 = vadd.f32 %v793_v21, %v1603_v24 }
  0xfa   :  { %v768_v36 = vadd.f32 %v767_v27, %v1607_v29  ;;  %v814_v37 = vmul.f32 %v1607_v29, %v1607_v29  ;;  %v777_v38 = vadd.f32 %v776_v28, %v1609_v30  ;;  %v815_v39 = vmul.f32 %v1609_v30, %v1609_v30 }
  0xfb   :  { %v837_v0 = vadd.f32 %v836_v46, %v812_v56  ;;  %v846_v1 = vadd.f32 %v845_v47, %v813_v42  ;;  %v1644_v56 = vld [vmem:[%s1706_s4] sm:$0xff]  ;;  %v1649_v42 = vld [vmem:[%s1706_s4 + $0x8] sm:$0xff] }
  0xfc   :  { %v769_v43 = vrot.slane %v768_v36, 4  ;;  %v820_v44 = vadd.f32 %v819_v33, %v814_v37  ;;  %v778_v55 = vrot.slane %v777_v38, 4  ;;  %v829_v45 = vadd.f32 %v828_v34, %v815_v39 }
  0xfe   :  { %v770_v52 = vadd.f32 %v769_v43, %v768_v36  ;;  %v821_v53 = vrot.slane %v820_v44, 4  ;;  %v779_v54 = vadd.f32 %v778_v55, %v777_v38  ;;  %v830_v57 = vrot.slane %v829_v45, 4  ;;  %v728_v60 = vpop.f32.mrf.mxu2  ;;  %v747_v61 = vpop.f32.mrf.mxu3 }
  0xff   :  { %v1631_v4 = vadd.f32 %v728_v60, %v497_v6  ;;  %v1633_v35 = vadd.f32 %v747_v61, %v516_v7 }
 0x100   :  { %v771_v40 = vrot.slane %v770_v52, 2  ;;  %v822_v5 = vadd.f32 %v821_v53, %v820_v44  ;;  %v780_v8 = vrot.slane %v779_v54, 2  ;;  %v831_v9 = vadd.f32 %v830_v57, %v829_v45  ;;  %v1656_v57 = vld [vmem:[%s1706_s4 + $0x10] sm:$0xff] }
 0x101   :  { %v786_v12 = vadd.f32 %v785_v48, %v1631_v4  ;;  %v816_v13 = vmul.f32 %v1631_v4, %v1631_v4  ;;  %v795_v14 = vadd.f32 %v794_v49, %v1633_v35  ;;  %v817_v15 = vmul.f32 %v1633_v35, %v1633_v35 }
 0x102   :  { %v772_v16 = vadd.f32 %v771_v40, %v770_v52  ;;  %v823_v17 = vrot.slane %v822_v5, 2  ;;  %v781_v6 = vadd.f32 %v780_v8, %v779_v54  ;;  %v832_v18 = vrot.slane %v831_v9, 2  ;;  %v1661_v8 = vld [vmem:[%s1706_s4 + $0x18] sm:$0xff] }
 0x103   :  { %v787_v7 = vrot.slane %v786_v12, 4  ;;  %v838_v19 = vadd.f32 %v837_v0, %v816_v13  ;;  %v796_v20 = vrot.slane %v795_v14, 4  ;;  %v847_v22 = vadd.f32 %v846_v1, %v817_v15 }
 0x104   :  { %v824_v25 = vadd.f32 %v823_v17, %v822_v5  ;;  %v833_v26 = vadd.f32 %v832_v18, %v831_v9  ;;  %v773_v27 = vrot.slane %v772_v16, 1  ;;  %v782_v28 = vrot.slane %v781_v6, 1 }
 0x105   :  { %v788_v31 = vadd.f32 %v787_v7, %v786_v12  ;;  %v839_v32 = vrot.slane %v838_v19, 4  ;;  %v797_v33 = vadd.f32 %v796_v20, %v795_v14  ;;  %v848_v34 = vrot.slane %v847_v22, 4 }
 0x106   :  { %v774_v36 = vadd.f32 %v773_v27, %v772_v16  ;;  %v783_v37 = vadd.f32 %v782_v28, %v781_v6  ;;  %v825_v43 = vrot.slane %v824_v25, 1  ;;  %v834_v44 = vrot.slane %v833_v26, 1 }
 0x107   :  { %v789_v38 = vrot.slane %v788_v31, 2  ;;  %v840_v39 = vadd.f32 %v839_v32, %v838_v19  ;;  %v849_v41 = vadd.f32 %v848_v34, %v847_v22  ;;  %v798_v21 = vrot.slane %v797_v33, 2 }
 0x108   :  { %v858_v48 = vmul.f32 %v1644_v56, %v774_v36  ;;  %v859_v53 = vmul.f32 %v1649_v42, %v783_v37  ;;  %v826_v60 = vadd.f32 %v825_v43, %v824_v25  ;;  %v835_v61 = vadd.f32 %v834_v44, %v833_v26 }
 0x109   :  { %v841_v55 = vrot.slane %v840_v39, 2  ;;  %v790_v45 = vadd.f32 %v789_v38, %v788_v31  ;;  %v799_v46 = vadd.f32 %v798_v21, %v797_v33  ;;  %v850_v47 = vrot.slane %v849_v41, 2 }
 0x10a   :  { %v862_v12 = vadd.f32 %v859_v53, %v858_v48  ;;  %v867_v14 = vmul.f32 %v1644_v56, %v826_v60  ;;  %v868_v6 = vmul.f32 %v1649_v42, %v835_v61  ;;  %v1387_v27 = vmov 0   ;;  %v893_v48 = vld [vmem:[%s1705_s3] sm:$0xff] }
 0x10b   :  { %v791_v49 = vrot.slane %v790_v45, 1  ;;  %v800_v52 = vrot.slane %v799_v46, 1  ;;  %v842_v54 = vadd.f32 %v841_v55, %v840_v39  ;;  %v851_v5 = vadd.f32 %v850_v47, %v849_v41  ;;  %1328 = vset.pattern.permute.xlu1 %v1387_v27  ;;  %1329 = vset.pattern.permute.xlu0 %v1387_v27  ;;  %v891_v55 = vld [vmem:[%s1704_s2] sm:$0xff]  ;;  %s1388_s2 = smov [#allocation5]  }
 0x10c   :  { %v871_v20 = vadd.f32 %v868_v6, %v867_v14  ;;  %s1030_s3 = sshll.u32 %s1388_s2, 4  ;;  %s1031_s3 = int_to_ptr.vmem [resolvable:$true] %s1030_s3 }
 0x10d   :  { %v792_v0 = vadd.f32 %v791_v49, %v790_v45  ;;  %v801_v1 = vadd.f32 %v800_v52, %v799_v46  ;;  %v843_v40 = vrot.slane %v842_v54, 1  ;;  %v852_v17 = vrot.slane %v851_v5, 1 }
 0x10f   :  { %v860_v9 = vmul.f32 %v1656_v57, %v792_v0  ;;  %v844_v13 = vadd.f32 %v843_v40, %v842_v54  ;;  %v861_v15 = vmul.f32 %v1661_v8, %v801_v1  ;;  %v853_v19 = vadd.f32 %v852_v17, %v851_v5 }
 0x111   :  { %v863_v16 = vadd.f32 %v862_v12, %v860_v9  ;;  %v869_v7 = vmul.f32 %v1656_v57, %v844_v13  ;;  %v870_v25 = vmul.f32 %v1661_v8, %v853_v19 }
 0x113   :  { %v864_v18 = vadd.f32 %v863_v16, %v861_v15  ;;  %v872_v22 = vadd.f32 %v871_v20, %v869_v7 }
 0x115   :  { %865 = vadd.xlane.f32.xlu0 %v864_v18  ;;  %v873_v26 = vadd.f32 %v872_v22, %v870_v25 }
 0x11d   :  { %874 = vadd.xlane.f32.xlu0 %v873_v26 }
 0x188   :  { %v866_v28 = vpop.xlane.xlu0 %865 }
 0x189   :  { %v876_v31 = vmul.f32 0.00048828125, %v866_v28 }
 0x18b   :  { %v878_v33 = vmul.f32 %v876_v31, %v876_v31 }
 0x190   :  { %v875_v32 = vpop.xlane.xlu0 %874 }
 0x191   :  { %v877_v34 = vmul.f32 0.00048828125, %v875_v32 }
 0x193   :  { %v879_v36 = vsub.f32 %v877_v34, %v878_v33 }
 0x195   :  { %v880_v37 = vadd.f32 1e-05, %v879_v36 }
 0x197   :  { %1330 = vrsqrt.f32 %v880_v37  ;;  %vm887_vm9 = vweird.f32 %v880_v37 }
 0x19d   :  { %v1331_v38 = vpop.eup %1330 }
 0x19e   :  { %v882_v39 = vmul.f32 %v1331_v38, %v880_v37  ;;  %vm888_vm8 = vweird.f32 %v1331_v38 }
 0x19f   :  { %vm889_vm10 = vmor %vm887_vm9, %vm888_vm8 }
 0x1a0   :  { %v883_v41 = vmul.f32 %v1331_v38, %v882_v39 }
 0x1a2   :  { %v884_v21 = vmul.f32 0.5, %v883_v41 }
 0x1a4   :  { %v885_v43 = vsub.f32 1.5, %v884_v21 }
 0x1a6   :  { %v886_v44 = vmul.f32 %v1331_v38, %v885_v43 }
 0x1a8   :  { %v890_v45 = vsel %vm889_vm10, %v1331_v38, %v886_v44 }
 0x1a9   :  { %v892_v46 = vmul.f32 %v891_v55, %v890_v45 }
 0x1ab   :  { %898 = vperm.xlu1 %1328, %v892_v46   ;;  %v894_v47 = vmul.f32 %v892_v46, %v876_v31 }
 0x1ad   :  { %v895_v49 = vsub.f32 %v893_v48, %v894_v47 }
 0x1b3   :  { %931 = vperm.xlu1 %1328, %v895_v49  }
 0x21d   :  { %v899_v52 = vpop.permute.xlu1 %898 }
 0x21e   :  { %v901_v53 = vmul.f32 %v899_v52, %v1644_v56  ;;  %v902_v54 = vmul.f32 %v899_v52, %v1649_v42  ;;  %v903_v60 = vmul.f32 %v899_v52, %v1656_v57  ;;  %v904_v61 = vmul.f32 %v899_v52, %v1661_v8 }
 0x220   :  { %v905_v0 = vrot.slane %v901_v53, 4  ;;  %v911_v1 = vrot.slane %v902_v54, 4  ;;  %v917_v40 = vrot.slane %v903_v60, 4  ;;  %v923_v5 = vrot.slane %v904_v61, 4 }
 0x222   :  { %v906_v9 = vadd.f32 %v905_v0, %v901_v53  ;;  %v912_v12 = vadd.f32 %v911_v1, %v902_v54  ;;  %v918_v13 = vadd.f32 %v917_v40, %v903_v60  ;;  %v924_v14 = vadd.f32 %v923_v5, %v904_v61 }
 0x224   :  { %v907_v15 = vrot.slane %v906_v9, 2  ;;  %v913_v16 = vrot.slane %v912_v12, 2  ;;  %v919_v17 = vrot.slane %v918_v13, 2  ;;  %v925_v18 = vrot.slane %v924_v14, 2 }
 0x225   :  { %v932_v6 = vpop.permute.xlu1 %931 }
 0x226   :  { %v934_v7 = vmul.f32 %v932_v6, %v1644_v56  ;;  %v935_v19 = vmul.f32 %v932_v6, %v1649_v42  ;;  %v936_v20 = vmul.f32 %v932_v6, %v1656_v57  ;;  %v937_v22 = vmul.f32 %v932_v6, %v1661_v8 }
 0x227   :  { %v908_v25 = vadd.f32 %v907_v15, %v906_v9  ;;  %v914_v26 = vadd.f32 %v913_v16, %v912_v12  ;;  %v920_v27 = vadd.f32 %v919_v17, %v918_v13  ;;  %v926_v34 = vadd.f32 %v925_v18, %v924_v14 }
 0x228   :  { %v938_v28 = vrot.slane %v934_v7, 4  ;;  %v944_v31 = vrot.slane %v935_v19, 4  ;;  %v950_v32 = vrot.slane %v936_v20, 4  ;;  %v956_v33 = vrot.slane %v937_v22, 4 }
 0x229   :  { %v909_v41 = vrot.slane %v908_v25, 1  ;;  %v915_v56 = vrot.slane %v914_v26, 1  ;;  %v921_v21 = vrot.slane %v920_v27, 1  ;;  %v927_v42 = vrot.slane %v926_v34, 1 }
 0x22a   :  { %v939_v36 = vadd.f32 %v938_v28, %v934_v7  ;;  %v945_v37 = vadd.f32 %v944_v31, %v935_v19  ;;  %v951_v38 = vadd.f32 %v950_v32, %v936_v20  ;;  %v957_v39 = vadd.f32 %v956_v33, %v937_v22 }
 0x22b   :  { %v910_v55 = vadd.f32 %v909_v41, %v908_v25  ;;  %v916_v45 = vadd.f32 %v915_v56, %v914_v26  ;;  %v922_v46 = vadd.f32 %v921_v21, %v920_v27  ;;  %v928_v53 = vadd.f32 %v927_v42, %v926_v34 }
 0x22c   :  { %v940_v43 = vrot.slane %v939_v36, 2  ;;  %v946_v57 = vrot.slane %v945_v37, 2  ;;  %v952_v44 = vrot.slane %v951_v38, 2  ;;  %v958_v8 = vrot.slane %v957_v39, 2 }
 0x22d   :  { %v962_v1 = vmul.f32 %v910_v55, %v1565_v58  ;;  %v963_v40 = vmul.f32 %v916_v45, %v1567_v59  ;;  %v964_v5 = vmul.f32 %v922_v46, %v1573_v2  ;;  %v965_v15 = vmul.f32 %v928_v53, %v1575_v3 }
 0x22e   :  { %v941_v47 = vadd.f32 %v940_v43, %v939_v36  ;;  %v947_v48 = vadd.f32 %v946_v57, %v945_v37  ;;  %v953_v49 = vadd.f32 %v952_v44, %v951_v38  ;;  %v959_v52 = vadd.f32 %v958_v8, %v957_v39 }
 0x22f   :  { %v966_v16 = vmul.f32 %v910_v55, %v1561_v50  ;;  %v967_v7 = vmul.f32 %v916_v45, %v1563_v51  ;;  %v968_v58 = vmul.f32 %v922_v46, %v1585_v10  ;;  %v969_v59 = vmul.f32 %v928_v53, %v1587_v11 }
 0x230   :  { %v942_v54 = vrot.slane %v941_v47, 1  ;;  %v948_v60 = vrot.slane %v947_v48, 1  ;;  %v954_v61 = vrot.slane %v953_v49, 1  ;;  %v960_v0 = vrot.slane %v959_v52, 1 }
 0x231   :  { %v970_v2 = vmul.f32 %v910_v55, %v1569_v62  ;;  %v971_v50 = vmul.f32 %v916_v45, %v1571_v63  ;;  %v972_v32 = vmul.f32 %v922_v46, %v1601_v23  ;;  %v973_v10 = vmul.f32 %v928_v53, %v1603_v24 }
 0x232   :  { %v943_v9 = vadd.f32 %v942_v54, %v941_v47  ;;  %v949_v12 = vadd.f32 %v948_v60, %v947_v48  ;;  %v955_v13 = vadd.f32 %v954_v61, %v953_v49  ;;  %v961_v14 = vadd.f32 %v960_v0, %v959_v52 }
 0x233   :  { %v974_v62 = vmul.f32 %v910_v55, %v1607_v29  ;;  %v975_v38 = vmul.f32 %v916_v45, %v1609_v30  ;;  %v976_v23 = vmul.f32 %v922_v46, %v1631_v4  ;;  %v977_v24 = vmul.f32 %v928_v53, %v1633_v35 }
 0x234   :  { %v978_v17 = vadd.f32 %v962_v1, %v943_v9  ;;  %v979_v6 = vadd.f32 %v963_v40, %v949_v12  ;;  %v980_v18 = vadd.f32 %v964_v5, %v955_v13  ;;  %v981_v19 = vadd.f32 %v965_v15, %v961_v14 }
 0x235   :  { %v982_v20 = vadd.f32 %v966_v16, %v943_v9  ;;  %v983_v22 = vadd.f32 %v967_v7, %v949_v12  ;;  %v984_v25 = vadd.f32 %v968_v58, %v955_v13  ;;  %v985_v28 = vadd.f32 %v969_v59, %v961_v14 }
 0x236   :  { %v994_v26 = vmax.f32 %v978_v17, 0.0  ;;  %v995_v27 = vmax.f32 %v979_v6, 0.0  ;;  %v996_v3 = vmax.f32 %v980_v18, 0.0  ;;  %v997_v31 = vmax.f32 %v981_v19, 0.0 }
 0x237   :  { %v986_v51 = vadd.f32 %v970_v2, %v943_v9  ;;  %v998_v33 = vmax.f32 %v982_v20, 0.0  ;;  %v987_v34 = vadd.f32 %v971_v50, %v949_v12  ;;  %v999_v11 = vmax.f32 %v983_v22, 0.0 }
 0x238   :  { %1010 = vst [vmem:[#allocation5] sm:$0xff] %v994_v26  ;;  %v988_v36 = vadd.f32 %v972_v32, %v955_v13  ;;  %v1000_v37 = vmax.f32 %v984_v25, 0.0  ;;  %v989_v63 = vadd.f32 %v973_v10, %v961_v14  ;;  %v1001_v39 = vmax.f32 %v985_v28, 0.0 }
 0x239   :  { %1011 = vst [vmem:[#allocation5 + $0x8] sm:$0xff] %v995_v27  ;;  %v990_v41 = vadd.f32 %v974_v62, %v943_v9  ;;  %v1002_v56 = vmax.f32 %v986_v51, 0.0  ;;  %v991_v21 = vadd.f32 %v975_v38, %v949_v12  ;;  %v1003_v42 = vmax.f32 %v987_v34, 0.0 }
 0x23a   :  { %1012 = vst [vmem:[#allocation5 + $0x10] sm:$0xff] %v996_v3  ;;  %v992_v43 = vadd.f32 %v976_v23, %v955_v13  ;;  %v1004_v29 = vmax.f32 %v988_v36, 0.0  ;;  %v993_v57 = vadd.f32 %v977_v24, %v961_v14  ;;  %v1005_v44 = vmax.f32 %v989_v63, 0.0 }
 0x23b   :  { %1013 = vst [vmem:[#allocation5 + $0x18] sm:$0xff] %v997_v31  ;;  %v1006_v30 = vmax.f32 %v990_v41, 0.0  ;;  %v1007_v8 = vmax.f32 %v991_v21, 0.0 }
 0x23c   :  { %1014 = vst [vmem:[#allocation5 + $0x20] sm:$0xff] %v998_v33  ;;  %v1008_v4 = vmax.f32 %v992_v43, 0.0  ;;  %v1009_v35 = vmax.f32 %v993_v57, 0.0 }
 0x23d   :  { %1015 = vst [vmem:[#allocation5 + $0x28] sm:$0xff] %v999_v11 }
 0x23e   :  { %1016 = vst [vmem:[#allocation5 + $0x30] sm:$0xff] %v1000_v37 }
 0x23f   :  { %1017 = vst [vmem:[#allocation5 + $0x38] sm:$0xff] %v1001_v39 }
 0x240   :  { %1018 = vst [vmem:[#allocation5 + $0x40] sm:$0xff] %v1002_v56 }
 0x241   :  { %1019 = vst [vmem:[#allocation5 + $0x48] sm:$0xff] %v1003_v42 }
 0x242   :  { %1020 = vst [vmem:[#allocation5 + $0x50] sm:$0xff] %v1004_v29 }
 0x243   :  { %1021 = vst [vmem:[#allocation5 + $0x58] sm:$0xff] %v1005_v44 }
 0x244   :  { %1022 = vst [vmem:[#allocation5 + $0x60] sm:$0xff] %v1006_v30 }
 0x245   :  { %1023 = vst [vmem:[#allocation5 + $0x68] sm:$0xff] %v1007_v8 }
 0x246   :  { %1024 = vst [vmem:[#allocation5 + $0x70] sm:$0xff] %v1008_v4 }
 0x247   :  { %1025 = vst [vmem:[#allocation5 + $0x78] sm:$0xff] %v1009_v35 }
 0x248   :  { %1038 = dma.vmem_to_hbm [thread:$0]  %s1031_s3, 2048, %s1033_s30, [#allocation4], %s1389_s6, %s1389_s6, %s1390_s7  }
 0x249   :  { %1382 = dma.done.wait [#allocation4], 2048  }
 0x24a   :  { %1383 = vsyncadd [#allocation4], 4294965248 }
 0x24b   :  { %1043 = vsyncpa [#allocation3], 1 }
 0x24c   :  { %1044 = vsyncpa [#allocation4], 1 }

</bundles_post_ra>
